<compile_context>
chip_gen: v6e
topology: v6e:2x2x1
jax: 0.10.0
libtpu: 0.0.40
codegen_flags: <defaults>
</compile_context>

<pallas_src>
import numpy as np

import jax
import jax.numpy as jnp
from jax.experimental import pallas as pl
from jax.experimental.pallas import tpu as pltpu


def _group_linear_kernel(x_ref, w_ref, o_ref, acc_ref):
    """One (group, m, n, k) grid step of the block-diagonal matmul.

    x_ref:   (tm, tk)  activation tile for this group / K-slice
    w_ref:   (tn, tk)  weight tile for this group (PyTorch (out, in) layout)
    o_ref:   (tm, tn)  output tile for this group
    acc_ref: (tm, tn)  f32 accumulator, persists across the K grid axis
    """
    k = pl.program_id(3)

    @pl.when(k == 0)
    def _():
        acc_ref[...] = jnp.zeros_like(acc_ref)

    # x @ w.T on the MXU, accumulating in f32.
    acc_ref[...] += jax.lax.dot_general(
        x_ref[...], w_ref[...],
        dimension_numbers=(((1,), (1,)), ((), ())),
        preferred_element_type=jnp.float32,
    )

    @pl.when(k == pl.num_programs(3) - 1)
    def _():
        o_ref[...] = acc_ref[...].astype(o_ref.dtype)


def _sublane_granule(dtype) -> int:
    # (8,128) rule scales with packing: f32 -> 8, bf16 -> 16, int8/fp8 -> 32.
    itemsize = jnp.dtype(dtype).itemsize
    return 8 * max(1, 4 // itemsize)


def _pick_tile(dim: int, target: int, granule: int) -> int:
    """Largest tile <= target that is a multiple of `granule` and divides `dim`.

    Falls back to the full extent, which is always legal for the last two
    block dims (and avoids ragged/garbage-padded K blocks in the reduction)."""
    if dim <= target or dim % granule != 0:
        return dim
    t = (target // granule) * granule
    while t >= granule:
        if dim % t == 0:
            return t
        t -= granule
    return dim


def group_linear(x, weight, bias=None, *, group_size=1,
                 tm_target=256, tn_target=256, tk_target=512):
    """Forward of GroupLinear / SparseLinear: block-diagonal linear layer.

    x:      (..., in_channels)
    weight: (out_channels, in_channels) dense weight (nn.Linear layout); only
            its block-diagonal groups contribute (the PyTorch forward masks
            everything else to zero).
    """
    in_channels = x.shape[-1]
    out_channels, w_in = weight.shape
    assert w_in == in_channels
    assert in_channels % group_size == 0
    group_num = in_channels // group_size
    in_scale = group_size                      # per-group K
    assert out_channels % group_num == 0
    out_scale = out_channels // group_num      # per-group N

    lead_shape = x.shape[:-1]
    m = int(np.prod(lead_shape)) if lead_shape else 1

    # Activations as (G, M, Kg): group axis leading, per-group features as the
    # (full-extent) last dim so every block satisfies the (8,128)/full-dim rule.
    xg = x.reshape(m, group_num, in_scale).transpose(1, 0, 2)
    # Extract the block-diagonal groups of the dense weight -> (G, Ng, Kg).
    wg = weight.reshape(group_num, out_scale, group_num, in_scale)[
        jnp.arange(group_num), :, jnp.arange(group_num), :]

    out_dtype = x.dtype
    sub = _sublane_granule(out_dtype)
    tm = _pick_tile(m, tm_target, sub)          # sublane dim of x / out blocks
    tn = _pick_tile(out_scale, tn_target, 128)  # lane dim of the output block
    tk = _pick_tile(in_scale, tk_target, 128)   # lane dim of x / w blocks

    grid = (group_num, m // tm, out_scale // tn, in_scale // tk)

    yg = pl.pallas_call(
        _group_linear_kernel,
        out_shape=jax.ShapeDtypeStruct((group_num, m, out_scale), out_dtype),
        grid_spec=pltpu.PrefetchScalarGridSpec(
            num_scalar_prefetch=0,
            grid=grid,
            in_specs=[
                pl.BlockSpec((pl.Squeezed(), tm, tk),
                             lambda g, i, j, k: (g, i, k)),
                pl.BlockSpec((pl.Squeezed(), tn, tk),
                             lambda g, i, j, k: (g, j, k)),
            ],
            out_specs=pl.BlockSpec((pl.Squeezed(), tm, tn),
                                   lambda g, i, j, k: (g, i, j)),
            scratch_shapes=[pltpu.VMEM((tm, tn), jnp.float32)],
        ),
        compiler_params=pltpu.CompilerParams(
            dimension_semantics=("parallel", "parallel", "parallel", "arbitrary"),
        ),
    )(xg, wg)

    out = yg.transpose(1, 0, 2).reshape(lead_shape + (out_channels,))
    if bias is not None:
        # GroupLinear defaults to bias=False; plain XLA add when provided.
        out = out + bias
    return out


if __name__ == "__main__":
    key = jax.random.PRNGKey(0)
    kx, kw = jax.random.split(key)

    # Small shapes consistent with the module's forward: x (..., in_channels).
    batch, seq = 2, 8
    in_channels, out_channels, group_size = 32, 32, 8
    group_num = in_channels // group_size
    in_scale = group_size
    out_scale = out_channels // group_num

    x = jax.random.normal(kx, (batch, seq, in_channels), dtype=jnp.float32)
    # Dense weight in PyTorch nn.Linear layout (out_features, in_features).
    weight = 0.1 * jax.random.normal(kw, (out_channels, in_channels),
                                     dtype=jnp.float32)

    y = group_linear(x, weight, bias=None, group_size=group_size)
    jax.block_until_ready(y)

    # Reference: exactly what the PyTorch module computes — mask the dense
    # weight to its block-diagonal, then F.linear (no bias by default).
    mask = np.ones((out_channels, in_channels), dtype=bool)
    for g in range(group_num):
        mask[g * out_scale:(g + 1) * out_scale,
             g * in_scale:(g + 1) * in_scale] = False
    w_masked = jnp.where(jnp.asarray(mask), 0.0, weight)
    y_ref = (x.reshape(-1, in_channels) @ w_masked.T).reshape(
        batch, seq, out_channels)

    assert y.shape == y_ref.shape
    assert jnp.allclose(y, y_ref, atol=1e-5, rtol=1e-5), "mismatch vs reference"
    print("KERNEL_OK")
</pallas_src>

<mosaic_0001>
module attributes {stable_mosaic.version = 11 : i64} {
  func.func @_group_linear_kernel(%arg0: i32, %arg1: i32, %arg2: i32, %arg3: i32, %arg4: memref<1x16x8xf32, #tpu.memory_space<vmem>>, %arg5: memref<1x8x8xf32, #tpu.memory_space<vmem>>, %arg6: memref<1x16x8xf32, #tpu.memory_space<vmem>>, %arg7: memref<16x8xf32, #tpu.memory_space<vmem>>) attributes {dimension_semantics = [#tpu.dimension_semantics<parallel>, #tpu.dimension_semantics<parallel>, #tpu.dimension_semantics<parallel>, #tpu.dimension_semantics<arbitrary>], iteration_bounds = array<i64: 4, 1, 1, 1>, scalar_prefetch = 0 : i64, scratch_operands = 1 : i64, tpu.core_type = #tpu.core_type<tc>, window_params = [{transform_indices = @transform_0, window_bounds = array<i64: 1, 16, 8>}, {transform_indices = @transform_1, window_bounds = array<i64: 1, 8, 8>}, {transform_indices = @transform_2, window_bounds = array<i64: 1, 16, 8>}]} {
    %c0_i32 = arith.constant 0 : i32
    %0 = arith.cmpi eq, %arg3, %c0_i32 : i32
    %1 = arith.extui %0 : i1 to i32
    %c0_i32_0 = arith.constant 0 : i32
    %2 = arith.cmpi ne, %1, %c0_i32_0 : i32
    scf.if %2 {
      %cst_12 = arith.constant 0.000000e+00 : f32
      %14 = vector.broadcast %cst_12 : f32 to vector<16x8xf32>
      %c0_13 = arith.constant 0 : index
      %c0_14 = arith.constant 0 : index
      %15 = vector.load %arg7[%c0_13, %c0_14] : memref<16x8xf32, #tpu.memory_space<vmem>>, vector<16x8xf32>
      tpu.vector_store %arg7[%c0_13, %c0_14], %14 {strides = array<i32>} : memref<16x8xf32, #tpu.memory_space<vmem>>, vector<16x8xf32>,
    } else {
    }
    %c0 = arith.constant 0 : index
    %c0_1 = arith.constant 0 : index
    %3 = vector.load %arg7[%c0, %c0_1] : memref<16x8xf32, #tpu.memory_space<vmem>>, vector<16x8xf32>
    %c0_2 = arith.constant 0 : index
    %c0_3 = arith.constant 0 : index
    %c0_4 = arith.constant 0 : index
    %4 = vector.load %arg4[%c0_2, %c0_3, %c0_4] : memref<1x16x8xf32, #tpu.memory_space<vmem>>, vector<1x16x8xf32>
    %5 = vector.shape_cast %4 : vector<1x16x8xf32> to vector<16x8xf32>
    %c0_5 = arith.constant 0 : index
    %c0_6 = arith.constant 0 : index
    %c0_7 = arith.constant 0 : index
    %6 = vector.load %arg5[%c0_5, %c0_6, %c0_7] : memref<1x8x8xf32, #tpu.memory_space<vmem>>, vector<1x8x8xf32>
    %7 = vector.shape_cast %6 : vector<1x8x8xf32> to vector<8x8xf32>
    %cst = arith.constant dense<0.000000e+00> : vector<16x8xf32>
    %8 = tpu.matmul %5, %7, %cst {dimension_numbers = #tpu.dot_dimension_numbers<[1], [1], [0], [0], [0, 0, 1, 0], [], []>} : vector<16x8xf32>, vector<8x8xf32>, vector<16x8xf32> -> vector<16x8xf32>
    %9 = arith.addf %3, %8 : vector<16x8xf32>
    %c0_8 = arith.constant 0 : index
    %c0_9 = arith.constant 0 : index
    %10 = vector.load %arg7[%c0_8, %c0_9] : memref<16x8xf32, #tpu.memory_space<vmem>>, vector<16x8xf32>
    tpu.vector_store %arg7[%c0_8, %c0_9], %9 {strides = array<i32>} : memref<16x8xf32, #tpu.memory_space<vmem>>, vector<16x8xf32>,
    %c0_i32_10 = arith.constant 0 : i32
    %11 = arith.cmpi eq, %arg3, %c0_i32_10 : i32
    %12 = arith.extui %11 : i1 to i32
    %c0_i32_11 = arith.constant 0 : i32
    %13 = arith.cmpi ne, %12, %c0_i32_11 : i32
    scf.if %13 {
      %c0_12 = arith.constant 0 : index
      %c0_13 = arith.constant 0 : index
      %14 = vector.load %arg7[%c0_12, %c0_13] : memref<16x8xf32, #tpu.memory_space<vmem>>, vector<16x8xf32>
      %c0_14 = arith.constant 0 : index
      %c0_15 = arith.constant 0 : index
      %c0_16 = arith.constant 0 : index
      %15 = vector.load %arg6[%c0_14, %c0_15, %c0_16] : memref<1x16x8xf32, #tpu.memory_space<vmem>>, vector<1x16x8xf32>
      %16 = vector.shape_cast %15 : vector<1x16x8xf32> to vector<16x8xf32>
      %17 = vector.shape_cast %14 : vector<16x8xf32> to vector<1x16x8xf32>
      tpu.vector_store %arg6[%c0_14, %c0_15, %c0_16], %17 {strides = array<i32>} : memref<1x16x8xf32, #tpu.memory_space<vmem>>, vector<1x16x8xf32>,
    } else {
    }
    return
  }
  func.func @transform_0(%arg0: i32, %arg1: i32, %arg2: i32, %arg3: i32) -> (i32, i32, i32) {
    %c0_i32 = arith.constant 0 : i32
    return %arg0, %arg1, %arg3 : i32, i32, i32
  }
  func.func @transform_1(%arg0: i32, %arg1: i32, %arg2: i32, %arg3: i32) -> (i32, i32, i32) {
    %c0_i32 = arith.constant 0 : i32
    return %arg0, %arg2, %arg3 : i32, i32, i32
  }
  func.func @transform_2(%arg0: i32, %arg1: i32, %arg2: i32, %arg3: i32) -> (i32, i32, i32) {
    %c0_i32 = arith.constant 0 : i32
    return %arg0, %arg1, %arg2 : i32, i32, i32
  }
}

</mosaic_0001>

<bundles_post_ra>
// kernel: tpu_custom_call.1
= control target key start
LH: loop header
LB: loop body
LE: loop exit
PB: predicated region body
PF: predicated region fallthrough
CT: control target
= control target key end

     0   :  { %s577_s9 = smov 0   ;;  %s579_s10 = smov 0   ;;  %s623_s0 = inlined_call_operand.vmem [shape: f32[4,16,8], index: 0, kind: input, shape index: {}]   ;;  %s624_s1 = inlined_call_operand.vmem [shape: f32[4,8,8], index: 1, kind: input, shape index: {}]   ;;  %s625_s2 = inlined_call_operand.vmem [shape: f32[4,16,8], index: 2, kind: output, shape index: {}]  }
   0x1   :  { %s581_s11 = smov 0  }
   0x2 LB: > { %s38_s12 = sadd.s32 1, %s555_s10  ;;  %p491_p0 = scmp.ge.s32.totalorder %s559_s11, 1  ;;  %s559_s11 = sphi %s581_s11, %s12_s11   ;;  %s555_s10 = sphi %s579_s10, %s627_s10   ;;  %s551_s9 = sphi %s577_s9, %s626_s9  }
   0x3   : > { %p40_p1 = scmp.ge.s32.totalorder %s38_s12, 4  ;;  %p173_p2 = scmp.lt.s32.totalorder %s559_s11, 5 }
   0x5   : > { %s629_s12 = smov (%p40_p1, %s38_s12), 0  ;;  %p174_p3 = pnand %p491_p0, %p173_p2 }
   0x6   : > { %p220_p4 = scmp.lt.s32.totalorder (!%p174_p3), %s551_s9, 3 }
   0x7   : > { %177 = sbr.rel (%p174_p3) target bundleno = 226 (0xe2), region = 28 }
   0xc   : > { %vm259_vm0 = vcmask 64512   ;;  %v561_v0 = vmov 0.0   ;;  %s631_s9 = smov (!%p220_p4, %s551_s9), 3 }
   0xd   : > { %261 = vst.msk [vmem:[#allocation2 + $0x8] sm:$0xff] %vm259_vm0, %v561_v0  ;;  %260 = vst.msk [vmem:[#allocation2] sm:$0xff] %vm259_vm0, %v561_v0  ;;  %s494_s13 = sshll.u32 %s631_s9, 3  ;;  %s502_s14 = sshll.u32 %s631_s9, 4 }
   0xe   : > { %s241_s17 = scalar_lea.vmem %s624_s1, %s494_s13  ;;  %s230_s20 = scalar_lea.vmem %s623_s0, %s502_s14 }
   0xf   : > { %v266_v1 = vld [vmem:[%s241_s17] sm:$0xff]  ;;  %v265_v3 = vld [vmem:[%s230_s20 + $0x8] sm:$0xff]  ;;  %s253_s23 = scalar_lea.vmem %s625_s2, %s502_s14 }
  0x10   : > { %v264_v2 = vld [vmem:[%s230_s20] sm:$0xff]  ;;  %507 = vmatprep.subr.msk.mxu0 %vm259_vm0, %v266_v1 }
  0x11   : > { %509 = vmatprep.mubr.msk.f32.mxu0 %vm259_vm0, %v264_v2  ;;  %508 = vmatpush3.xpose.msk.msra.mxu0 %vm259_vm0, %v266_v1 }
  0x14   : > { %510 = vmatmul.mubr.msk.f32.vlgmr.msra.gmra.mxu0 %vm259_vm0, %v265_v3  ;;  %v263_v4 = vld [vmem:[#allocation2 + $0x8] sm:$0xff]  ;;  %v262_v6 = vld [vmem:[#allocation2] sm:$0xff] }
  0xd4   : > { %v511_v5 = vpop.f32.mrf.mxu0 }
  0xd5   : > { %v353_v7 = vadd.f32 %v511_v5, %v263_v4 }
  0xd6   : > { %v343_v8 = vpop.f32.mrf.mxu0 }
  0xd7   : > { %355 = vst.msk [vmem:[#allocation2 + $0x8] sm:$0xff] %vm259_vm0, %v353_v7  ;;  %v352_v9 = vadd.f32 %v343_v8, %v262_v6 }
  0xd9   : > { %354 = vst.msk [vmem:[#allocation2] sm:$0xff] %vm259_vm0, %v352_v9 }
  0xde   : > { %v360_v10 = vld [vmem:[#allocation2 + $0x8] sm:$0xff] }
  0xdf   : > { %362 = vst.msk [vmem:[%s253_s23 + $0x8] sm:$0xff] %vm259_vm0, %v360_v10 }
  0xe0   : > { %v359_v11 = vld [vmem:[#allocation2] sm:$0xff] }
  0xe1   : > { %361 = vst.msk [vmem:[%s253_s23] sm:$0xff] %vm259_vm0, %v359_v11 }
  0xe2 PF: > { %s12_s11 = sadd.s32 1, %s559_s11   ;;  %s626_s9 = smov %s555_s10 }
  0xe3   : > { %p9_p5 = scmp.ge.s32.totalorder %s12_s11, 6   ;;  %s627_s10 = smov %s629_s12 }
  0xe5   :  { %11 = sbr.rel (!%p9_p5) target bundleno = 2 (0x2), region = 69 }

</bundles_post_ra>
